<compile_context>
chip_gen: v7x
topology: tpu7x:2x2x1
jax: 0.10.0
libtpu: 0.0.40
codegen_flags: <defaults>
</compile_context>

<pallas_src>
import functools

import jax
import jax.numpy as jnp
from jax import lax
from jax.experimental import pallas as pl
from jax.experimental.pallas import tpu as pltpu

KH, KW = 3, 3     # kernel_size=(3, 3)
LANE = 128        # TPU lane width


def _conv_bn_relu_kernel(x_ref, w_ref, scale_ref, shift_ref, o_ref, *, TH, W, Cin):
    """One grid step == one (batch, H-strip) tile.

    x_ref:     (1, H+2, W+2, Cin)      padded NHWC input, bf16, whole image in VMEM
    w_ref:     (KH*KW*Cin, Cout_pad)   matmul-ready weight, bf16, lane-dense
    scale_ref: (1, Cout_pad)           folded BN scale (f32)
    shift_ref: (1, Cout_pad)           folded BN shift incl. conv bias (f32)
    o_ref:     (1, TH*W, Cout_pad)     lane-dense output strip
    """
    h = pl.program_id(1)
    row0 = pl.multiple_of(h * TH, TH)
    # Row strip plus the 2-row halo needed by the 3x3 window (cheap: the H axis
    # is a non-tiled major dim of the VMEM block).
    xs = x_ref[0, pl.ds(row0, TH + 2), :, :]                 # (TH+2, W+2, Cin)

    # im2col, built once per grid step.  The kw shift lands on the sublane axis,
    # so it is hoisted: only KW shifted views are materialized; the kh shift is
    # a cheap major-axis slice.  Tap order (kw outer, kh inner) matches the
    # weight layout produced in the wrapper.
    taps = []
    for kw in range(KW):
        xw = xs[:, kw:kw + W, :]                             # (TH+2, W, Cin)
        for kh in range(KH):
            taps.append(xw[kh:kh + TH])                      # (TH, W, Cin)
    cols = jnp.concatenate(taps, axis=-1)                    # (TH, W, KH*KW*Cin)
    cols = cols.reshape(TH * W, KH * KW * Cin)               # 2-D, matmul-ready

    # Single MXU contraction per grid step, f32 accumulation.
    acc = jnp.dot(cols, w_ref[...], preferred_element_type=jnp.float32)

    # Fused eval-mode BatchNorm (folded) + ReLU epilogue, f32, 2-D lane-dense.
    acc = acc * scale_ref[0, :] + shift_ref[0, :]
    acc = jnp.maximum(acc, 0.0)
    o_ref[0] = acc.astype(o_ref.dtype)


def conv2d_bn_relu(x_nchw, weight, bias, gamma, beta, running_mean, running_var,
                   eps=1e-5):
    """x_nchw: (N, Cin, H, W); weight: (Cout, Cin, KH, KW) (PyTorch OIHW)."""
    N, Cin, H, W = x_nchw.shape
    Cout = weight.shape[0]
    K = KH * KW * Cin
    cout_pad = ((Cout + LANE - 1) // LANE) * LANE

    # H-strip per grid step (halo is sliced in-kernel from the resident block).
    TH = 8 if H % 8 == 0 else H
    NH = H // TH

    # --- Glue (layout only, no hot-path compute) ---------------------------
    x_nhwc = jnp.transpose(x_nchw, (0, 2, 3, 1))                      # NHWC
    x_pad = jnp.pad(x_nhwc, ((0, 0), (1, 1), (1, 1), (0, 0)))         # SAME pad
    x_pad = x_pad.astype(jnp.bfloat16)                                # bf16 HBM

    # Matmul-ready weight: OIHW -> (KW, KH, Cin, Cout) -> (K, Cout_pad), bf16.
    w2d = jnp.transpose(weight, (3, 2, 1, 0)).reshape(K, Cout)
    w2d = jnp.pad(w2d, ((0, 0), (0, cout_pad - Cout))).astype(jnp.bfloat16)

    # Fold eval-mode BN + conv bias into per-channel scale/shift (f32).
    inv_std = 1.0 / jnp.sqrt(running_var + eps)
    scale = (gamma * inv_std).astype(jnp.float32)
    shift = (beta + (bias - running_mean) * gamma * inv_std).astype(jnp.float32)
    scale = jnp.pad(scale, (0, cout_pad - Cout)).reshape(1, cout_pad)
    shift = jnp.pad(shift, (0, cout_pad - Cout)).reshape(1, cout_pad)

    kernel = functools.partial(_conv_bn_relu_kernel, TH=TH, W=W, Cin=Cin)
    out_flat = pl.pallas_call(
        kernel,
        out_shape=jax.ShapeDtypeStruct((N, H * W, cout_pad), x_nchw.dtype),
        grid_spec=pltpu.PrefetchScalarGridSpec(
            num_scalar_prefetch=0,
            grid=(N, NH),
            in_specs=[
                # Whole padded image per batch; constant across the h axis, so
                # it stays VMEM-resident while strips are computed.
                pl.BlockSpec((1, H + 2, W + 2, Cin), lambda n, h: (n, 0, 0, 0)),
                pl.BlockSpec((K, cout_pad), lambda n, h: (0, 0)),
                pl.BlockSpec((1, cout_pad), lambda n, h: (0, 0)),
                pl.BlockSpec((1, cout_pad), lambda n, h: (0, 0)),
            ],
            out_specs=pl.BlockSpec((1, TH * W, cout_pad), lambda n, h: (n, h, 0)),
        ),
        compiler_params=pltpu.CompilerParams(
            dimension_semantics=("parallel", "parallel"),
            vmem_limit_bytes=64 * 1024 * 1024),
    )(x_pad, w2d, scale, shift)

    # Drop the lane padding, restore NCHW.
    out = out_flat[:, :, :Cout].reshape(N, H, W, Cout)
    return jnp.transpose(out, (0, 3, 1, 2))


if __name__ == "__main__":
    # Small shapes: batch=2, in_channels=4, out_channels=8, spatial=16x16.
    N, Cin, Cout, H, W = 2, 4, 8, 16, 16

    key = jax.random.PRNGKey(0)
    kx, kw, kb = jax.random.split(key, 3)
    x = jax.random.normal(kx, (N, Cin, H, W), dtype=jnp.float32)

    # Deterministic parameter init (synthetic, not a checkpoint load).
    weight = jax.random.normal(kw, (Cout, Cin, KH, KW), jnp.float32) * 0.1
    bias = jax.random.normal(kb, (Cout,), jnp.float32) * 0.1
    gamma = jnp.ones((Cout,), jnp.float32)           # BatchNorm2d weight
    beta = jnp.zeros((Cout,), jnp.float32)           # BatchNorm2d bias
    running_mean = jnp.zeros((Cout,), jnp.float32)
    running_var = jnp.ones((Cout,), jnp.float32)

    out = conv2d_bn_relu(x, weight, bias, gamma, beta, running_mean, running_var)
    out = jax.block_until_ready(out)

    # Reference check against XLA conv + BN(eval) + ReLU (f32 end to end).
    ref = lax.conv_general_dilated(
        x, weight, window_strides=(1, 1), padding="SAME",
        dimension_numbers=("NCHW", "OIHW", "NCHW"),
        preferred_element_type=jnp.float32)
    ref = ref + bias.reshape(1, Cout, 1, 1)
    ref = (ref - running_mean.reshape(1, Cout, 1, 1)) / jnp.sqrt(
        running_var.reshape(1, Cout, 1, 1) + 1e-5)
    ref = ref * gamma.reshape(1, Cout, 1, 1) + beta.reshape(1, Cout, 1, 1)
    ref = jnp.maximum(ref, 0.0)
    assert out.shape == (N, Cout, H, W)
    # bf16 matmul operands with f32 accumulation -> slightly wider tolerance.
    assert jnp.allclose(out, ref, atol=3e-2, rtol=3e-2)

    print("KERNEL_OK")
</pallas_src>

<mosaic_0001>
module attributes {stable_mosaic.version = 11 : i64} {
  func.func @_conv_bn_relu_kernel(%arg0: i32, %arg1: i32, %arg2: memref<1x18x18x4xbf16, #tpu.memory_space<vmem>>, %arg3: memref<36x128xbf16, #tpu.memory_space<vmem>>, %arg4: memref<1x128xf32, #tpu.memory_space<vmem>>, %arg5: memref<1x128xf32, #tpu.memory_space<vmem>>, %arg6: memref<1x128x128xf32, #tpu.memory_space<vmem>>) attributes {dimension_semantics = [#tpu.dimension_semantics<parallel>, #tpu.dimension_semantics<parallel>], iteration_bounds = array<i64: 2, 2>, scalar_prefetch = 0 : i64, scratch_operands = 0 : i64, tpu.core_type = #tpu.core_type<tc>, window_params = [{transform_indices = @transform_0, window_bounds = array<i64: 1, 18, 18, 4>}, {pipeline_mode = #tpu.pipeline_mode<synchronous>, transform_indices = @transform_1, window_bounds = array<i64: 36, 128>}, {pipeline_mode = #tpu.pipeline_mode<synchronous>, transform_indices = @transform_2, window_bounds = array<i64: 1, 128>}, {pipeline_mode = #tpu.pipeline_mode<synchronous>, transform_indices = @transform_3, window_bounds = array<i64: 1, 128>}, {transform_indices = @transform_4, window_bounds = array<i64: 1, 128, 128>}]} {
    %c8_i32 = arith.constant 8 : i32
    %0 = arith.muli %arg1, %c8_i32 : i32
    %1 = tpu.assume_multiple %0, 8 : i32
    %c0 = arith.constant 0 : index
    %2 = arith.index_cast %1 : i32 to index
    %c0_0 = arith.constant 0 : index
    %c0_1 = arith.constant 0 : index
    %3 = vector.load %arg2[%c0, %2, %c0_0, %c0_1] : memref<1x18x18x4xbf16, #tpu.memory_space<vmem>>, vector<1x10x18x4xbf16>
    %4 = vector.shape_cast %3 : vector<1x10x18x4xbf16> to vector<10x18x4xbf16>
    %5 = vector.extract_strided_slice %4 {offsets = [0, 0, 0], sizes = [10, 16, 4], strides = [1, 1, 1]} : vector<10x18x4xbf16> to vector<10x16x4xbf16>
    %6 = vector.extract_strided_slice %5 {offsets = [0, 0, 0], sizes = [8, 16, 4], strides = [1, 1, 1]} : vector<10x16x4xbf16> to vector<8x16x4xbf16>
    %7 = vector.extract_strided_slice %5 {offsets = [1, 0, 0], sizes = [8, 16, 4], strides = [1, 1, 1]} : vector<10x16x4xbf16> to vector<8x16x4xbf16>
    %8 = vector.extract_strided_slice %5 {offsets = [2, 0, 0], sizes = [8, 16, 4], strides = [1, 1, 1]} : vector<10x16x4xbf16> to vector<8x16x4xbf16>
    %9 = vector.extract_strided_slice %4 {offsets = [0, 1, 0], sizes = [10, 16, 4], strides = [1, 1, 1]} : vector<10x18x4xbf16> to vector<10x16x4xbf16>
    %10 = vector.extract_strided_slice %9 {offsets = [0, 0, 0], sizes = [8, 16, 4], strides = [1, 1, 1]} : vector<10x16x4xbf16> to vector<8x16x4xbf16>
    %11 = vector.extract_strided_slice %9 {offsets = [1, 0, 0], sizes = [8, 16, 4], strides = [1, 1, 1]} : vector<10x16x4xbf16> to vector<8x16x4xbf16>
    %12 = vector.extract_strided_slice %9 {offsets = [2, 0, 0], sizes = [8, 16, 4], strides = [1, 1, 1]} : vector<10x16x4xbf16> to vector<8x16x4xbf16>
    %13 = vector.extract_strided_slice %4 {offsets = [0, 2, 0], sizes = [10, 16, 4], strides = [1, 1, 1]} : vector<10x18x4xbf16> to vector<10x16x4xbf16>
    %14 = vector.extract_strided_slice %13 {offsets = [0, 0, 0], sizes = [8, 16, 4], strides = [1, 1, 1]} : vector<10x16x4xbf16> to vector<8x16x4xbf16>
    %15 = vector.extract_strided_slice %13 {offsets = [1, 0, 0], sizes = [8, 16, 4], strides = [1, 1, 1]} : vector<10x16x4xbf16> to vector<8x16x4xbf16>
    %16 = vector.extract_strided_slice %13 {offsets = [2, 0, 0], sizes = [8, 16, 4], strides = [1, 1, 1]} : vector<10x16x4xbf16> to vector<8x16x4xbf16>
    %17 = tpu.concatenate %6, %7, %8, %10, %11, %12, %14, %15, %16 in 2 : vector<8x16x4xbf16>, vector<8x16x4xbf16>, vector<8x16x4xbf16>, vector<8x16x4xbf16>, vector<8x16x4xbf16>, vector<8x16x4xbf16>, vector<8x16x4xbf16>, vector<8x16x4xbf16>, vector<8x16x4xbf16> -> vector<8x16x36xbf16>
    %18 = vector.shape_cast %17 : vector<8x16x36xbf16> to vector<128x36xbf16>
    %c0_2 = arith.constant 0 : index
    %c0_3 = arith.constant 0 : index
    %19 = vector.load %arg3[%c0_2, %c0_3] : memref<36x128xbf16, #tpu.memory_space<vmem>>, vector<36x128xbf16>
    %cst = arith.constant dense<0.000000e+00> : vector<128x128xf32>
    %20 = tpu.matmul %18, %19, %cst {dimension_numbers = #tpu.dot_dimension_numbers<[1], [0], [0], [1], [0, 0, 1, 1], [], []>} : vector<128x36xbf16>, vector<36x128xbf16>, vector<128x128xf32> -> vector<128x128xf32>
    %c0_4 = arith.constant 0 : index
    %c0_5 = arith.constant 0 : index
    %21 = vector.load %arg4[%c0_4, %c0_5] : memref<1x128xf32, #tpu.memory_space<vmem>>, vector<1x128xf32>
    %22 = vector.shape_cast %21 : vector<1x128xf32> to vector<128xf32>
    %23 = vector.shape_cast %22 : vector<128xf32> to vector<1x128xf32>
    %24 = vector.broadcast %23 : vector<1x128xf32> to vector<128x128xf32>
    %25 = arith.mulf %20, %24 : vector<128x128xf32>
    %c0_6 = arith.constant 0 : index
    %c0_7 = arith.constant 0 : index
    %26 = vector.load %arg5[%c0_6, %c0_7] : memref<1x128xf32, #tpu.memory_space<vmem>>, vector<1x128xf32>
    %27 = vector.shape_cast %26 : vector<1x128xf32> to vector<128xf32>
    %28 = vector.shape_cast %27 : vector<128xf32> to vector<1x128xf32>
    %29 = vector.broadcast %28 : vector<1x128xf32> to vector<128x128xf32>
    %30 = arith.addf %25, %29 : vector<128x128xf32>
    %cst_8 = arith.constant 0.000000e+00 : f32
    %31 = vector.broadcast %cst_8 : f32 to vector<128x128xf32>
    %32 = arith.maximumf %30, %31 : vector<128x128xf32>
    %c0_9 = arith.constant 0 : index
    %c0_10 = arith.constant 0 : index
    %c0_11 = arith.constant 0 : index
    %33 = vector.load %arg6[%c0_9, %c0_10, %c0_11] : memref<1x128x128xf32, #tpu.memory_space<vmem>>, vector<1x128x128xf32>
    %34 = vector.shape_cast %33 : vector<1x128x128xf32> to vector<128x128xf32>
    %35 = vector.shape_cast %32 : vector<128x128xf32> to vector<1x128x128xf32>
    tpu.vector_store %arg6[%c0_9, %c0_10, %c0_11], %35 {strides = array<i32>} : memref<1x128x128xf32, #tpu.memory_space<vmem>>, vector<1x128x128xf32>,
    return
  }
  func.func @transform_0(%arg0: i32, %arg1: i32) -> (i32, i32, i32, i32) {
    %c0_i32 = arith.constant 0 : i32
    %c0_i32_0 = arith.constant 0 : i32
    %c0_i32_1 = arith.constant 0 : i32
    %c0_i32_2 = arith.constant 0 : i32
    return %arg0, %c0_i32, %c0_i32_0, %c0_i32_1 : i32, i32, i32, i32
  }
  func.func @transform_1(%arg0: i32, %arg1: i32) -> (i32, i32) {
    %c0_i32 = arith.constant 0 : i32
    %c0_i32_0 = arith.constant 0 : i32
    %c0_i32_1 = arith.constant 0 : i32
    return %c0_i32, %c0_i32_0 : i32, i32
  }
  func.func @transform_2(%arg0: i32, %arg1: i32) -> (i32, i32) {
    %c0_i32 = arith.constant 0 : i32
    %c0_i32_0 = arith.constant 0 : i32
    %c0_i32_1 = arith.constant 0 : i32
    return %c0_i32, %c0_i32_0 : i32, i32
  }
  func.func @transform_3(%arg0: i32, %arg1: i32) -> (i32, i32) {
    %c0_i32 = arith.constant 0 : i32
    %c0_i32_0 = arith.constant 0 : i32
    %c0_i32_1 = arith.constant 0 : i32
    return %c0_i32, %c0_i32_0 : i32, i32
  }
  func.func @transform_4(%arg0: i32, %arg1: i32) -> (i32, i32, i32) {
    %c0_i32 = arith.constant 0 : i32
    %c0_i32_0 = arith.constant 0 : i32
    return %arg0, %arg1, %c0_i32 : i32, i32, i32
  }
}

</mosaic_0001>

<bundles_post_ra>
// kernel: tpu_custom_call.1
= control target key start
LH: loop header
LB: loop body
LE: loop exit
PB: predicated region body
PF: predicated region fallthrough
CT: control target
= control target key end

     0   :  { %s2447_s0 = inlined_call_operand.hbm [shape: bf16[2,18,18,4], index: 0, kind: input, shape index: {}]   ;;  %s2448_s1 = inlined_call_operand.hbm [shape: bf16[36,128], index: 1, kind: input, shape index: {}]   ;;  %s2449_s2 = inlined_call_operand.hbm [shape: f32[1,128], index: 2, kind: input, shape index: {}]   ;;  %s2450_s3 = inlined_call_operand.hbm [shape: f32[1,128], index: 3, kind: input, shape index: {}]   ;;  %s2451_s4 = inlined_call_operand.hbm [shape: f32[2,256,128], index: 4, kind: output, shape index: {}]  }
   0x1   :  { %2464 = sst [smem:[#allocation19_spill]] %s2448_s1 }
   0x2   :  { %2465 = sst [smem:[#allocation20_spill]] %s2449_s2 }
   0x3   :  { %2466 = sst [smem:[#allocation21_spill]] %s2451_s4 }
   0x4   :  { %9 = vsyncpa [#allocation3], 0 }
   0x5   :  { %11 = vsyncpa [#allocation3 + $0x1], 0 }
   0x6   :  { %12 = vsyncpa [#allocation6], 0 }
   0x7   :  { %13 = vsyncpa [#allocation9], 0 }
   0x8   :  { %14 = vsyncpa [#allocation4], 0 }
   0x9   :  { %16 = vsyncpa [#allocation4 + $0x1], 0  ;;  %s1706_s15 = smov 0   ;;  %s1708_s16 = smov 0  }
   0xa   :  { %s1710_s17 = smov 0   ;;  %s1712_s18 = smov 0  }
   0xb   :  { %s1714_s19 = smov 0   ;;  %s1716_s20 = smov 0  }
   0xc   :  { %s1718_s21 = smov 0   ;;  %s1720_s22 = smov 0  }
   0xd   :  { %s1722_s23 = smov 0   ;;  %s1724_s24 = smov 0  }
   0xe   :  { %s1726_s25 = smov 0  }
   0xf LB: > { %2467 = sst [smem:[#allocation15_spill]] %s1623_s15  ;;  %s1152_s26 = sadd.s32 4294967295, %s1663_s25   ;;  %s1663_s25 = sphi %s1726_s25, %s22_s25   ;;  %s1659_s24 = sphi %s1724_s24, %s2505_s24   ;;  %s1655_s23 = sphi %s1722_s23, %s2504_s23   ;;  %s1651_s22 = sphi %s1720_s22, %s2503_s22   ;;  %s1647_s21 = sphi %s1718_s21, %s2502_s21   ;;  %s1643_s20 = sphi %s1716_s20, %s2501_s20   ;;  %s1639_s19 = sphi %s1714_s19, %s2500_s19   ;;  %s1635_s18 = sphi %s1712_s18, %s2499_s18   ;;  %s1631_s17 = sphi %s1710_s17, %s2498_s17   ;;  %s1627_s16 = sphi %s1708_s16, %s2497_s16   ;;  %s1623_s15 = sphi %s1706_s15, %s2496_s15  }
  0x10   : > { %2468 = sst [smem:[#allocation16_spill]] %s1651_s22  ;;  %s1153_s27 = sadd.s32 4294967294, %s1663_s25  }
  0x11   : > { %p54_p0 = scmp.ne.s32.totalorder %s1639_s19, %s1635_s18  ;;  %p1762_p1 = scmp.eq.s32.totalorder %s1152_s26, 0 }
  0x12   : > { %p142_p2 = scmp.ne.s32.totalorder %s1631_s17, %s1627_s16  ;;  %p143_p4 = scmp.eq.s32.totalorder %s1152_s26, 3 }
  0x13   : > { %s2469_s28 = scalar_select %p1762_p1, 1, 0 }
  0x14   : > { %p1771_p3 = por %p1762_p1, %p54_p0  ;;  %p148_p5 = scmp.ne.s32.totalorder %s1627_s16, %s1623_s15 }
  0x15   : > { %p149_p6 = scmp.eq.s32.totalorder %s1153_s27, 3  ;;  %p1777_p7 = por %p143_p4, %p142_p2 }
  0x16   : > { %s2470_s30 = scalar_select %p1771_p3, 1, 0 }
  0x17   : > { %s2471_s5 = scalar_select %p1777_p7, 1, 0 }
  0x18   : > { %p1154_p8 = scmp.ge.s32.totalorder %s1663_s25, 1  ;;  %p1782_p9 = por %p149_p6, %p148_p5 }
  0x19   : > { %2472 = sst [smem:[#allocation17_spill]] %s2471_s5  ;;  %p156_p10 = scmp.lt.s32.totalorder %s1663_s25, 5 }
  0x1a   : > { %s2473_s6 = scalar_select %p1782_p9, 1, 0 }
  0x1b   : > { %p1787_p11 = pnand %p1154_p8, %p156_p10  ;;  %s1665_s8 = smov [#allocation5]  }
  0x1c   : > { %2474 = sst [smem:[#allocation18_spill]] %s2473_s6  ;;  %s168_s9 = sshll.u32 %s1665_s8, 4  ;;  %s1791_s9 = int_to_ptr.vmem [resolvable:$true] %s168_s9 }
  0x1d   : > { %s2475_s7 = scalar_select %p1787_p11, 1, 0 }
  0x1e   : > { %p1268_p12 = pneg %p1787_p11  ;;  %s1666_s11 = smov [#allocation7]  }
  0x1f   : > { %s182_s12 = sshll.u32 %s1666_s11, 4  ;;  %s1667_s13 = smov [#allocation8]   ;;  %s1801_s12 = int_to_ptr.vmem [resolvable:$true] %s182_s12 }
  0x20   : > { %p1797_p13 = pnand %p1268_p12, %p1762_p1  ;;  %s1803_s14 = sshll.u32 %s1667_s13, 4  ;;  %s194_s14 = int_to_ptr.vmem [resolvable:$true] %s1803_s14 }
  0x21   : > { %s2477_s1 = sld [smem:[#allocation19_spill]] }
  0x22   : > { %p1813_p2 = pneg %p1797_p13 }
  0x27   : > { %s1419_s27 = scalar_lea.hbm %s2477_s1, 320 }
  0x28   : > { %p1420_p0 = scmp.ne.s32.totalorder %s2477_s1, %s1419_s27  ;;  %p1426_p6 = scmp.lt.u32.totalorder %s1419_s27, %s2477_s1 }
  0x2a   : > { %p1422_p4 = pnand %p1813_p2, %p1420_p0 }
  0x2c   : > { %p1423_p5 = pneg %p1422_p4 }
  0x2e   : > { %p1428_p8 = pnand %p1426_p6, %p1423_p5 }
  0x30   : > { %1431 = shalt.err (!%p1428_p8)
}
  0x31   : > { %s1432_s29 = scalar_lea.vmem %s1791_s9, 320  ;;  %p1440_p7 = scmp.lt.s32.totalorder %s1791_s9, %s1791_s9 }
  0x32   : > { %p1433_p10 = scmp.ne.s32.totalorder %s1791_s9, %s1432_s29  ;;  %p1441_p1 = scmp.lt.s32.totalorder %s1432_s29, %s1432_s29 }
  0x34   : > { %p1435_p12 = pnand %p1433_p10, %p1813_p2  ;;  %p1442_p0 = por %p1441_p1, %p1440_p7 }
  0x36   : > { %p1436_p9 = pneg %p1435_p12 }
  0x38   : > { %p1443_p4 = pnand %p1442_p0, %p1436_p9 }
  0x3a   : > { %1446 = shalt.err (!%p1443_p4)
}
  0x3b   : > { %s2462_s18 = smov 64   ;;  %s2463_s26 = smov 4  }
  0x3c   : > { %1271 = dma.hbm_to_vmem [thread:$0]  (!%p1797_p13), %s2477_s1, 320, %s1791_s9, [#allocation6], %s2462_s18, %s2462_s18, %s2463_s26  }
  0x3d   : > { %s2479_s2 = sld [smem:[#allocation20_spill]] }
  0x43   : > { %s1447_s29 = scalar_lea.hbm %s2479_s2, 16 }
  0x44   : > { %p1448_p1 = scmp.ne.s32.totalorder %s2479_s2, %s1447_s29  ;;  %p1454_p5 = scmp.lt.u32.totalorder %s1447_s29, %s2479_s2 }
  0x46   : > { %p1450_p7 = pnand %p1448_p1, %p1813_p2 }
  0x48   : > { %p1451_p9 = pneg %p1450_p7 }
  0x4a   : > { %p1456_p6 = pnand %p1454_p5, %p1451_p9 }
  0x4c   : > { %1459 = shalt.err (!%p1456_p6)
}
  0x4d   : > { %s1460_s9 = scalar_lea.vmem %s1801_s12, 16  ;;  %s1467_s4 = scalar_lea.vmem %s1801_s12, 32 }
  0x4e   : > { %p1461_p8 = scmp.ne.s32.totalorder %s1801_s12, %s1460_s9  ;;  %p1468_p0 = scmp.lt.s32.totalorder %s1801_s12, %s1801_s12 }
  0x4f   : > { %p1469_p4 = scmp.lt.s32.totalorder %s1467_s4, %s1460_s9 }
  0x50   : > { %p1463_p10 = pnand %p1461_p8, %p1813_p2 }
  0x51   : > { %p1470_p1 = por %p1469_p4, %p1468_p0 }
  0x52   : > { %p1464_p12 = pneg %p1463_p10 }
  0x54   : > { %p1471_p7 = pnand %p1470_p1, %p1464_p12 }
  0x56   : > { %1474 = shalt.err (!%p1471_p7)
}
  0x57   : > { %1274 = dma.hbm_to_vmem [thread:$0]  (!%p1797_p13), %s2479_s2, 16, %s1801_s12, [#allocation6]  }
  0x58   : > { %s1475_s8 = scalar_lea.hbm %s2450_s3, 16 }
  0x59   : > { %p1476_p9 = scmp.ne.s32.totalorder %s2450_s3, %s1475_s8  ;;  %p1482_p8 = scmp.lt.u32.totalorder %s1475_s8, %s2450_s3 }
  0x5b   : > { %p1478_p5 = pnand %p1476_p9, %p1813_p2 }
  0x5d   : > { %p1479_p6 = pneg %p1478_p5 }
  0x5f   : > { %p1484_p10 = pnand %p1482_p8, %p1479_p6 }
  0x61   : > { %1487 = shalt.err (!%p1484_p10)
}
  0x62   : > { %s1488_s4 = scalar_lea.vmem %s194_s14, 16  ;;  %s1495_s12 = scalar_lea.vmem %s194_s14, 32 }
  0x63   : > { %p1489_p12 = scmp.ne.s32.totalorder %s194_s14, %s1488_s4  ;;  %p1496_p1 = scmp.lt.s32.totalorder %s194_s14, %s194_s14 }
  0x64   : > { %p1497_p7 = scmp.lt.s32.totalorder %s1495_s12, %s1488_s4 }
  0x65   : > { %p1491_p0 = pnand %p1489_p12, %p1813_p2 }
  0x66   : > { %p1498_p3 = por %p1497_p7, %p1496_p1 }
  0x67   : > { %p1492_p4 = pneg %p1491_p0 }
  0x69   : > { %p1499_p11 = pnand %p1498_p3, %p1492_p4 }
  0x6b   : > { %1502 = shalt.err (!%p1499_p11)
}
  0x6c   : > { %1277 = dma.hbm_to_vmem [thread:$0]  (!%p1797_p13), %s2450_s3, 16, %s194_s14, [#allocation9]  }
  0x6d   : > { %s31_s6 = sadd.s32 1, %s1655_s23  ;;  %s34_s5 = sadd.s32 1, %s1659_s24 }
  0x6e   : > { %p32_p3 = scmp.ge.s32.totalorder %s31_s6, 2  ;;  %s41_s10 = sadd.s32 1, %s1643_s20 }
  0x6f   : > { %p48_p11 = scmp.ne.s32.totalorder %s1643_s20, %s1639_s19  ;;  %p49_p2 = scmp.eq.s32.totalorder %s1663_s25, 0 }
  0x70   : > { %s2507_s6 = smov (%p32_p3, %s31_s6), 0  ;;  %s2509_s5 = smov (!%p32_p3, %s34_s5), %s1659_s24 }
  0x71   : > { %s128_s27 = ssub.s32 %s1655_s23, %s2507_s6  ;;  %p36_p9 = scmp.ge.s32.totalorder %s2509_s5, 2 }
  0x72   : > { %p1289_p5 = scmp.lt.s32.totalorder %s1663_s25, 4  ;;  %p1892_p13 = por %p49_p2, %p48_p11 }
  0x73   : > { %s204_s8 = sand.u32 1, %s1643_s20   ;;  %s2511_s5 = smov (%p36_p9, %s2509_s5), 0 }
  0x74   : > { %s1249_s11 = smul.u32 216, %s204_s8  ;;  %s38_s13 = ssub.s32 %s1659_s24, %s2511_s5 }
  0x75   : > { %s1250_s29 = smul.u32 3456, %s1659_s24  ;;  %p39_p6 = scmp.eq.s32.totalorder %s38_s13, 0 }
  0x76   : > { %s129_s9 = sor.u32 %s128_s27, %s38_s13  ;;  %s2481_s12 = sadd.s32 1, %s1631_s17 }
  0x77   : > { %p130_p8 = scmp.eq.s32.totalorder %s129_s9, 0  ;;  %s1913_s26 = scalar_lea.hbm %s2447_s0, %s1250_s29 }
  0x78   : > { %s1903_s4 = scalar_select %p39_p6, %s1643_s20, %s41_s10  }
  0x79   : > { %s1908_s15 = scalar_select %p130_p8, %s1631_s17, %s2481_s12  }
  0x7a   : > { %s208_s1 = scalar_lea.vmem [#allocation2], %s1249_s11  ;;  %p1921_p10 = pnand %p1289_p5, %p1892_p13 }
  0x7b   : > { %s215_s2 = sshll.u32 %s208_s1, 4  ;;  %s1925_s27 = scalar_lea.sflag [#allocation3], %s204_s8  ;;  %s1915_s2 = int_to_ptr.vmem [resolvable:$true] %s215_s2 }
  0x7c   : > { %s1503_s18 = scalar_lea.hbm %s1913_s26, 3456  ;;  %p1505_p0 = pneg %p1921_p10 }
  0x7d   : > { %p1504_p12 = scmp.ne.s32.totalorder %s1913_s26, %s1503_s18  ;;  %s1508_s14 = scalar_lea.hbm %s2447_s0, 6912 }
  0x7e   : > { %p1509_p7 = scmp.lt.u32.totalorder %s1913_s26, %s2447_s0  ;;  %p1510_p3 = scmp.lt.u32.totalorder %s1508_s14, %s1503_s18 }
  0x7f   : > { %p1506_p4 = pnand %p1505_p0, %p1504_p12  ;;  %p1512_p2 = scmp.lt.u32.totalorder %s1503_s18, %s1913_s26 }
  0x80   : > { %p1511_p11 = por %p1510_p3, %p1509_p7 }
  0x81   : > { %p1507_p1 = pneg %p1506_p4 }
  0x82   : > { %p1513_p9 = por %p1512_p2, %p1511_p11 }
  0x84   : > { %p1514_p5 = pnand %p1513_p9, %p1507_p1 }
  0x86   : > { %1517 = shalt.err (!%p1514_p5)
}
  0x87   : > { %s1518_s8 = scalar_lea.vmem %s1915_s2, 3456  ;;  %s1670_s9 = smov [#allocation2]  }
  0x88   : > { %p1519_p13 = scmp.ne.s32.totalorder %s1915_s2, %s1518_s8  ;;  %s1523_s12 = sshll.u32 %s1670_s9, 4  ;;  %s1524_s12 = int_to_ptr.vmem [resolvable:$false] %s1523_s12 }
  0x89   : > { %s1525_s22 = scalar_lea.vmem %s1524_s12, 6912  ;;  %p1526_p12 = scmp.lt.s32.totalorder %s1915_s2, %s1524_s12 }
  0x8a   : > { %p1521_p6 = pnand %p1519_p13, %p1505_p0  ;;  %p1527_p4 = scmp.lt.s32.totalorder %s1525_s22, %s1518_s8 }
  0x8c   : > { %p1522_p8 = pneg %p1521_p6  ;;  %p1528_p7 = por %p1527_p4, %p1526_p12 }
  0x8e   : > { %p1529_p3 = pnand %p1528_p7, %p1522_p8 }
  0x90   : > { %1532 = shalt.err (!%p1529_p3)
}
  0x91   : > { %s2483_s18 = smov 4   ;;  %s2484_s1 = smov 64  }
  0x92   : > { %1281 = dma.hbm_to_vmem [thread:$0]  (!%p1921_p10), %s1913_s26, 3456, %s1915_s2, %s1925_s27, %s2484_s1, %s2484_s1, %s2483_s18  }
  0x93   : > { %p2485_p0 = scmp.ne.s32.totalorder %s2475_s7, 0 }
  0x94   : > { %s229_s11 = sand.u32 (!%p2485_p0), 1, %s1639_s19   ;;  %p2486_p1 = scmp.ne.s32.totalorder (!%p2485_p0), %s2470_s30, 0 }
  0x95   : > { %227 = sbr.rel (%p2485_p0) target bundleno = 642 (0x282), region = 36  ;;  %s230_s13 = scalar_lea.sflag (!%p2485_p0), [#allocation3], %s229_s11 }
  0x96   : > { %s1251_s14 = smul.u32 (!%p2485_p0), 216, %s229_s11 }
  0x98   : > { %s233_s29 = scalar_lea.vmem (!%p2485_p0), [#allocation2], %s1251_s14 }
  0x9c   : > { %1606 = dma.done.wait (%p2486_p1), %s230_s13, 3456  }
  0x9d   : > { %1608 = vsyncadd (%p2486_p1), %s230_s13, 4294963840  ;;  %p2487_p11 = scmp.ne.s32.totalorder %s2469_s28, 0 }
  0x9f   : > { %1610 = dma.done.wait (%p2487_p11), [#allocation6], 336  }
  0xa0   : > { %1612 = vsyncadd (%p2487_p11), [#allocation6], 4294966960 }
  0xa1   : > { %1614 = dma.done.wait (%p2487_p11), [#allocation9], 16  }
  0xa2   : > { %1616 = vsyncadd (%p2487_p11), [#allocation9], 4294967280  ;;  %s1207_s2 = smul.u32 96, %s1647_s21  ;;  %s1671_s30 = smov 4   ;;  %vm412_vm0 = vsmask.f32 7424 }
  0xa3   : > { %s1672_s28 = smov 8   ;;  %s1673_s26 = smov 12   ;;  %vm587_vm1 = vcmask 1046528   ;;  %vm839_vm2 = vcmask 1041408   ;;  %vm666_vm3 = vcmask 31744   ;;  %vm683_vm4 = vcmask 64512  }
  0xa4   : > { %s1972_s7 = scalar_lea.vmem %s233_s29, %s1207_s2 [#allocation2]  ;;  %s1674_s10 = smov 16   ;;  %vm700_vm5 = vcmask 97280   ;;  %vm717_vm6 = vcmask 130048   ;;  %vm734_vm7 = vcmask 162816   ;;  %vm751_vm8 = vcmask 195584  }
  0xa5   : > { %v1975_v0 = vld [vmem:[%s1972_s7 + $0x18] sm:$0xff]   ;;  %v1978_v1 = vld [vmem:[%s1972_s7 + $0xc] sm:$0xff]   ;;  %v2007_v10 = vld [vmem:[%s1972_s7] sm:$0xff]   ;;  %s1675_s27 = smov 20   ;;  %s1676_s8 = smov 24   ;;  %vm768_vm9 = vcmask 228352  }
  0xa6   : > { %353 = vrot.lane.b32.xlu1 %v1975_v0, %s1671_s30  ;;  %v1983_v2 = vld [vmem:[%s1972_s7 + $0x48] sm:$0xff]   ;;  %351 = vrot.lane.b32.xlu0 %v1978_v1, %s1671_s30  ;;  %v1988_v3 = vld [vmem:[%s1972_s7 + $0x3c] sm:$0xff]   ;;  %v426_v4 = vshrl.u32 %v1978_v1, 16  ;;  %v428_v6 = vshll.u32 %v1978_v1, 16  ;;  %v414_v17 = vshrl.u32 %v2007_v10, 16  ;;  %v416_v18 = vshll.u32 %v2007_v10, 16 }
  0xa7   : > { %v474_v5 = vshrl.u32 %v1988_v3, 16  ;;  %v1998_v7 = vld [vmem:[%s1972_s7 + $0x30] sm:$0xff]   ;;  %v2001_v8 = vld [vmem:[%s1972_s7 + $0x38] ss:$0 sps:$4 sm:$0x11]   ;;  %v476_v11 = vshll.u32 %v1988_v3, 16 }
  0xa8   : > { %v2004_v9 = vld [vmem:[%s1972_s7 + $0x54] sm:$0xff]   ;;  %v2011_v12 = vld [vmem:[%s1972_s7 + $0x24] sm:$0xff]   ;;  %v462_v13 = vshrl.u32 %v1998_v7, 16  ;;  %v464_v14 = vshll.u32 %v1998_v7, 16  ;;  %v469_v15 = vshll.u32 %v2001_v8, 16  ;;  %v430_v20 = vrot.slane %v428_v6, 1 }
  0xa9   : > { %v2017_v16 = vld [vmem:[%s1972_s7 + $0x8] ss:$0 sps:$4 sm:$0x11]   ;;  %v478_v19 = vrot.slane %v476_v11, 1  ;;  %v418_v25 = vrot.slane %v416_v18, 1  ;;  %v488_v33 = vshll.u32 %v1983_v2, 16 }
  0xaa   : > { %361 = vrot.lane.b32.xlu1 %v1983_v2, %s1671_s30  ;;  %359 = vrot.lane.b32.xlu0 %v1988_v3, %s1671_s30  ;;  %v466_v21 = vrot.slane %v464_v14, 1  ;;  %v471_v22 = vrot.slane %v469_v15, 1  ;;  %v421_v23 = vshll.u32 %v2017_v16, 16  ;;  %v2027_v24 = vld [vmem:[%s1972_s7 + $0x44] ss:$0 sps:$4 sm:$0x11]   ;;  %v431_v40 = vor.u32 %v430_v20, %v426_v4 }
  0xab   : > { %v2030_v26 = vld [vmem:[%s1972_s7 + $0x14] ss:$0 sps:$4 sm:$0x11]   ;;  %v481_v29 = vshll.u32 %v2027_v24, 16  ;;  %v419_v30 = vor.u32 %v418_v25, %v414_v17  ;;  %v440_v34 = vshll.u32 %v1975_v0, 16  ;;  %v479_v36 = vor.u32 %v478_v19, %v474_v5  ;;  %v2075_v61 = vld [vmem:[%s1972_s7 + $0x60] sm:$0xff]  }
  0xac   : > { %v467_v27 = vor.u32 %v466_v21, %v462_v13  ;;  %v423_v28 = vrot.slane %v421_v23, 1  ;;  %v433_v31 = vshll.u32 %v2030_v26, 16  ;;  %v2037_v32 = vld [vmem:[%s1972_s7 + $0x50] ss:$0 sps:$4 sm:$0x11]   ;;  %v438_v42 = vshrl.u32 %v1975_v0, 16 }
  0xad   : > { %v483_v37 = vrot.slane %v481_v29, 1  ;;  %v2047_v38 = vld [vmem:[%s1972_s7 + $0x20] ss:$0 sps:$4 sm:$0x11]   ;;  %v486_v43 = vshrl.u32 %v1983_v2, 16  ;;  %v490_v44 = vrot.slane %v488_v33, 1 }
  0xae   : > { %380 = vrot.lane.b32.xlu1 %v1983_v2, %s1672_s28  ;;  %372 = vrot.lane.b32.xlu0 %v1975_v0, %s1672_s28  ;;  %v2044_v35 = vsel %vm412_vm0, %v467_v27, %v471_v22  ;;  %v424_v39 = vsel %vm412_vm0, %v419_v30, %v423_v28  ;;  %v435_v41 = vrot.slane %v433_v31, 1  ;;  %v493_v46 = vshll.u32 %v2037_v32, 16  ;;  %v2062_v50 = vld [vmem:[%s1972_s7 + $0x5c] ss:$0 sps:$4 sm:$0x11]   ;;  %v2091_v13 = vld [vmem:[%s1972_s7 + $0x6c] sm:$0xff]  }
  0xaf   : > { %v2056_v45 = vsel %vm412_vm0, %v479_v36, %v483_v37  ;;  %v442_v47 = vrot.slane %v440_v34, 1  ;;  %v445_v48 = vshll.u32 %v2047_v38, 16  ;;  %v500_v51 = vshll.u32 %v2004_v9, 16  ;;  %v2068_v52 = vld [vmem:[%s1972_s7 + $0x2c] ss:$0 sps:$4 sm:$0x11]  }
  0xb0   : > { %v436_v49 = vsel %vm412_vm0, %v431_v40, %v435_v41  ;;  %v491_v53 = vor.u32 %v490_v44, %v486_v43  ;;  %v495_v54 = vrot.slane %v493_v46, 1  ;;  %v505_v57 = vshll.u32 %v2062_v50, 16  ;;  %v1414_v62 = vld [vmem:[%s1972_s7 + $0x68] ss:$0 sps:$4 sm:$0x11]   ;;  %s1677_s9 = smov 28  }
  0xb1   : > { %v443_v55 = vor.u32 %v442_v47, %v438_v42  ;;  %v447_v56 = vrot.slane %v445_v48, 1  ;;  %v452_v58 = vshll.u32 %v2011_v12, 16  ;;  %v498_v59 = vshrl.u32 %v2004_v9, 16  ;;  %v1415_v4 = vld [vmem:[%s1972_s7 + $0x74] ss:$0 sps:$4 sm:$0x11]  }
  0xb2   : > { %382 = vrot.lane.b32.xlu1 %v2004_v9, %s1672_s28  ;;  %374 = vrot.lane.b32.xlu0 %v2011_v12, %s1672_s28  ;;  %v502_v60 = vrot.slane %v500_v51, 1  ;;  %v457_v63 = vshll.u32 %v2068_v52, 16  ;;  %v2084_v5 = vsel %vm412_vm0, %v491_v53, %v495_v54  ;;  %v450_v11 = vshrl.u32 %v2011_v12, 16  ;;  %s1678_s12 = smov 32   ;;  %s267_s22 = sand.u32 1, %s1627_s16  }
  0xb3   : > { %v2087_v6 = vsel %vm412_vm0, %v443_v55, %v447_v56  ;;  %v507_v14 = vrot.slane %v505_v57, 1  ;;  %v454_v15 = vrot.slane %v452_v58, 1  ;;  %v529_v17 = vshrl.u32 %v2075_v61, 16  ;;  %s1164_s18 = sshll.u32 %s267_s22, 7  ;;  %s2488_s11 = sld [smem:[#allocation16_spill]] }
  0xb4   : > { %v531_v18 = vshll.u32 %v2075_v61, 16  ;;  %v503_v19 = vor.u32 %v502_v60, %v498_v59  ;;  %v536_v20 = vshll.u32 %v1414_v62, 16  ;;  %v560_v21 = vshrl.u32 %v2091_v13, 16  ;;  %s2335_s1 = scalar_lea.vmem [#allocation10], %s1164_s18  ;;  %s1202_s14 = sshll.u32 %s1647_s21, 4 }
  0xb5   : > { %v562_v22 = vshll.u32 %v2091_v13, 16  ;;  %v459_v23 = vrot.slane %v457_v63, 1  ;;  %v567_v27 = vshll.u32 %v1415_v4, 16  ;;  %v628_v28 = vrot.slane %v2075_v61, 1  ;;  %s1034_s2 = sshll.u32 %s2335_s1, 4  ;;  %s2489_s7 = sld [smem:[#allocation17_spill]]  ;;  %s2378_s2 = int_to_ptr.vmem [resolvable:$true] %s1034_s2 }
  0xb6   : > { %517 = vrot.lane.b32.xlu1 %v2044_v35, %s1673_s26  ;;  %509 = vrot.lane.b32.xlu0 %v424_v39, %s1673_s26  ;;  %v533_v25 = vrot.slane %v531_v18, 1  ;;  %v538_v29 = vrot.slane %v536_v20, 1  ;;  %v629_v31 = vrot.slane %v1414_v62, 1  ;;  %v647_v33 = vrot.slane %v2091_v13, 1 }
  0xb7   : > { %v564_v30 = vrot.slane %v562_v22, 1  ;;  %v455_v34 = vor.u32 %v454_v15, %v450_v11  ;;  %v569_v37 = vrot.slane %v567_v27, 1  ;;  %v648_v39 = vrot.slane %v1415_v4, 1  ;;  %v1418_v11 = vld [vmem:[#allocation5 + $0x10] ss:$0 sps:$4 sm:$0x33]  }
  0xb8   : > { %v534_v36 = vor.u32 %v533_v25, %v529_v17  ;;  %v2104_v41 = vsel %vm587_vm1, %v628_v28, %v629_v31  ;;  %v2117_v44 = vsel %vm412_vm0, %v503_v19, %v507_v14  ;;  %v600_v46 = vrot.slane %v1998_v7, 1 }
  0xb9   : > { %v565_v40 = vor.u32 %v564_v30, %v560_v21  ;;  %v2112_v43 = vsel %vm587_vm1, %v647_v33, %v648_v39  ;;  %v601_v47 = vrot.slane %v2001_v8, 1  ;;  %v588_v51 = vrot.slane %v2007_v10, 1  ;;  %s1203_s13 = sshll.u32 %s2488_s11, 5 }
  0xba   : > { %519 = vrot.lane.b32.xlu1 %v2056_v45, %s1673_s26  ;;  %511 = vrot.lane.b32.xlu0 %v436_v49, %s1673_s26  ;;  %v2109_v42 = vsel %vm412_vm0, %v534_v36, %v538_v29  ;;  %v589_v53 = vrot.slane %v2017_v16, 1  ;;  %v603_v8 = vrot.slane %v1988_v3, 1  ;;  %v604_v55 = vrot.slane %v2027_v24, 1  ;;  %v1416_v16 = vld [vmem:[#allocation5] sm:$0xff]   ;;  %v1417_v24 = vld [vmem:[#allocation5 + $0x8] sm:$0xff]   ;;  %s2351_s29 = sadd.s32 %s1203_s13, %s1202_s14 }
  0xbb   : > { %v2122_v48 = vsel %vm412_vm0, %v565_v40, %v569_v37  ;;  %v2134_v54 = vsel %vm587_vm1, %v600_v46, %v601_v47  ;;  %v591_v57 = vrot.slane %v1978_v1, 1  ;;  %v592_v58 = vrot.slane %v2030_v26, 1  ;;  %1219 = vmatprep.subr.bf16.mxu0 %v1416_v16  ;;  %1241 = vmatprep.subr.bf16.mxu1 %v1416_v16  ;;  %s1204_s21 = sshll.u32 %s2351_s29, 7  ;;  %p2491_p2 = scmp.ne.s32.totalorder %s2489_s7, 0 }
  0xbc   : > { %v590_v56 = vsel %vm587_vm1, %v588_v51, %v589_v53  ;;  %v2145_v59 = vsel %vm587_vm1, %v603_v8, %v604_v55  ;;  %1220 = vmatpush3.bf16.msra.mxu0 %v1416_v16  ;;  %1244 = vmatpush3.bf16.msra.mxu1 %v1416_v16  ;;  %v606_v26 = vrot.slane %v1983_v2, 1  ;;  %v607_v62 = vrot.slane %v2037_v32, 1 }
  0xbd   : > { %v593_v60 = vsel %vm587_vm1, %v591_v57, %v592_v58  ;;  %1221 = vmatprep.subr.bf16.mxu0 %v1417_v24  ;;  %v594_v63 = vrot.slane %v1975_v0, 1  ;;  %v595_v4 = vrot.slane %v2047_v38, 1  ;;  %1242 = vmatprep.subr.bf16.mxu1 %v1417_v24  ;;  %v841_v32 = vsel %vm839_vm2, %v1418_v11, 0 }
  0xbe   : > { %548 = vrot.lane.b32.xlu1 %v2056_v45, %s1674_s10  ;;  %540 = vrot.lane.b32.xlu0 %v436_v49, %s1674_s10  ;;  %v2125_v49 = vsel %vm412_vm0, %v455_v34, %v459_v23  ;;  %v608_v14 = vsel %vm587_vm1, %v606_v26, %v607_v62  ;;  %v609_v38 = vrot.slane %v2004_v9, 1  ;;  %v610_v17 = vrot.slane %v2062_v50, 1 }
  0xbf   : > { %v596_v15 = vsel %vm587_vm1, %v594_v63, %v595_v4  ;;  %v597_v18 = vrot.slane %v2011_v12, 1  ;;  %v598_v19 = vrot.slane %v2068_v52, 1  ;;  %vm785_vm10 = vcmask 261120  }
  0xc0   : > { %1222 = vmatpush3.bf16.msra.mxu0 %v1417_v24  ;;  %1245 = vmatpush3.bf16.msra.mxu1 %v1417_v24  ;;  %v611_v20 = vsel %vm587_vm1, %v609_v38, %v610_v17  ;;  %vm822_vm11 = vcmask 293888  }
  0xc1   : > { %1247 = vmatprep.subr.msk.bf16.mxu0 %vm839_vm2, %v1418_v11  ;;  %1248 = vmatprep.subr.msk.bf16.mxu1 %vm839_vm2, %v1418_v11  ;;  %v599_v21 = vsel %vm587_vm1, %v597_v18, %v598_v19 }
  0xc2   : > { %550 = vrot.lane.b32.xlu1 %v2084_v5, %s1674_s10  ;;  %542 = vrot.lane.b32.xlu0 %v2087_v6, %s1674_s10 }
  0xc4   : > { %1224 = vmatpush3.bf16.msra.mxu0 %v841_v32  ;;  %1246 = vmatpush3.bf16.msra.mxu1 %v841_v32 }
  0xc6   : > { %579 = vrot.lane.b32.xlu1 %v2084_v5, %s1675_s27  ;;  %571 = vrot.lane.b32.xlu0 %v2087_v6, %s1675_s27 }
  0xca   : > { %581 = vrot.lane.b32.xlu1 %v2117_v44, %s1675_s27  ;;  %573 = vrot.lane.b32.xlu0 %v2125_v49, %s1675_s27 }
  0xce   : > { %620 = vrot.lane.b32.xlu1 %v2134_v54, %s1676_s8  ;;  %612 = vrot.lane.b32.xlu0 %v590_v56, %s1676_s8 }
  0xd2   : > { %622 = vrot.lane.b32.xlu1 %v2145_v59, %s1676_s8  ;;  %614 = vrot.lane.b32.xlu0 %v593_v60, %s1676_s8 }
  0xd6   : > { %639 = vrot.lane.b32.xlu1 %v2145_v59, %s1677_s9  ;;  %631 = vrot.lane.b32.xlu0 %v593_v60, %s1677_s9 }
  0xda   : > { %641 = vrot.lane.b32.xlu1 %v608_v14, %s1677_s9  ;;  %633 = vrot.lane.b32.xlu0 %v596_v15, %s1677_s9 }
  0xde   : > { %658 = vrot.lane.b32.xlu1 %v608_v14, %s1678_s12  ;;  %650 = vrot.lane.b32.xlu0 %v596_v15, %s1678_s12 }
  0xe2   : > { %363 = vrot.lane.b32.xlu1 %v2004_v9, %s1671_s30  ;;  %355 = vrot.lane.b32.xlu0 %v2011_v12, %s1671_s30 }
  0xe6   : > { %660 = vrot.lane.b32.xlu1 %v611_v20, %s1678_s12  ;;  %652 = vrot.lane.b32.xlu0 %v599_v21, %s1678_s12 }
  0xea   : > { %365 = vrot.lane.b32.xlu1 %v2075_v61, %s1671_s30  ;;  %357 = vrot.lane.b32.xlu0 %v1998_v7, %s1671_s30 }
  0xee   : > { %384 = vrot.lane.b32.xlu1 %v2075_v61, %s1672_s28  ;;  %376 = vrot.lane.b32.xlu0 %v1998_v7, %s1672_s28 }
  0xf2   : > { %386 = vrot.lane.b32.xlu1 %v2091_v13, %s1672_s28  ;;  %378 = vrot.lane.b32.xlu0 %v1988_v3, %s1672_s28 }
  0xf6   : > { %521 = vrot.lane.b32.xlu1 %v2084_v5, %s1673_s26  ;;  %513 = vrot.lane.b32.xlu0 %v2087_v6, %s1673_s26 }
  0xfa   : > { %523 = vrot.lane.b32.xlu1 %v2117_v44, %s1673_s26  ;;  %515 = vrot.lane.b32.xlu0 %v2125_v49, %s1673_s26 }
  0xfe   : > { %552 = vrot.lane.b32.xlu1 %v2117_v44, %s1674_s10  ;;  %544 = vrot.lane.b32.xlu0 %v2125_v49, %s1674_s10 }
 0x102   : > { %554 = vrot.lane.b32.xlu1 %v2109_v42, %s1674_s10  ;;  %546 = vrot.lane.b32.xlu0 %v2044_v35, %s1674_s10  ;;  %s2490_s10 = sld [smem:[#allocation21_spill]] }
 0x106   : > { %583 = vrot.lane.b32.xlu1 %v2109_v42, %s1675_s27  ;;  %575 = vrot.lane.b32.xlu0 %v2044_v35, %s1675_s27 }
 0x10a   : > { %585 = vrot.lane.b32.xlu1 %v2122_v48, %s1675_s27  ;;  %577 = vrot.lane.b32.xlu0 %v2056_v45, %s1675_s27  ;;  %s2374_s27 = scalar_lea.hbm %s2490_s10, %s1204_s21 }
 0x10e   : > { %624 = vrot.lane.b32.xlu1 %v608_v14, %s1676_s8  ;;  %616 = vrot.lane.b32.xlu0 %v596_v15, %s1676_s8 }
 0x112   : > { %626 = vrot.lane.b32.xlu1 %v611_v20, %s1676_s8  ;;  %618 = vrot.lane.b32.xlu0 %v599_v21, %s1676_s8  ;;  %s2385_s8 = scalar_lea.sflag [#allocation4], %s267_s22 }
 0x116   : > { %643 = vrot.lane.b32.xlu1 %v611_v20, %s1677_s9  ;;  %635 = vrot.lane.b32.xlu0 %v599_v21, %s1677_s9 }
 0x118   : > { %v2218_v50 = vpop.permute.xlu1 %353  ;;  %v352_v35 = vpop.permute.xlu0 %351 }
 0x119   : > { %v668_v47 = vsel %vm666_vm3, %v2007_v10, %v352_v35  ;;  %v670_v4 = vsel %vm666_vm3, %v1978_v1, %v2218_v50 }
 0x11a   : > { %645 = vrot.lane.b32.xlu1 %v2104_v41, %s1677_s9  ;;  %637 = vrot.lane.b32.xlu0 %v2134_v54, %s1677_s9  ;;  %s1533_s9 = scalar_lea.vmem %s2378_s2, 2048 }
 0x11b   : > { %p1534_p10 = scmp.ne.s32.totalorder %s2378_s2, %s1533_s9 }
 0x11c   : > { %v362_v45 = vpop.permute.xlu1 %361  ;;  %v360_v52 = vpop.permute.xlu0 %359 }
 0x11d   : > { %v676_v46 = vsel %vm666_vm3, %v1998_v7, %v360_v52  ;;  %v678_v62 = vsel %vm666_vm3, %v1988_v3, %v362_v45  ;;  %p1535_p9 = pnand %p1534_p10, %p2491_p2 }
 0x11e   : > { %662 = vrot.lane.b32.xlu1 %v2104_v41, %s1678_s12  ;;  %654 = vrot.lane.b32.xlu0 %v2134_v54, %s1678_s12 }
 0x11f   : > { %p1536_p5 = pneg %p1535_p9 }
 0x120   : > { %v381_v61 = vpop.permute.xlu1 %380  ;;  %v373_v5 = vpop.permute.xlu0 %372 }
 0x121   : > { %v693_v48 = vsel %vm683_vm4, %v676_v46, %v381_v61  ;;  %v685_v49 = vsel %vm683_vm4, %v668_v47, %v373_v5 }
 0x122   : > { %664 = vrot.lane.b32.xlu1 %v2112_v43, %s1678_s12  ;;  %656 = vrot.lane.b32.xlu0 %v2145_v59, %s1678_s12  ;;  %s1679_s12 = smov [#allocation10]  }
 0x123   : > { %s1537_s18 = sshll.u32 %s1679_s12, 4  ;;  %s1538_s18 = int_to_ptr.vmem [resolvable:$false] %s1537_s18 }
 0x124   : > { %v383_v6 = vpop.permute.xlu1 %382  ;;  %v375_v13 = vpop.permute.xlu0 %374  ;;  %s1539_s11 = scalar_lea.vmem %s1538_s18, 4096  ;;  %p1540_p13 = scmp.lt.s32.totalorder %s2378_s2, %s1538_s18 }
 0x125   : > { %v695_v11 = vsel %vm683_vm4, %v678_v62, %v383_v6  ;;  %v687_v14 = vsel %vm683_vm4, %v670_v4, %v375_v13  ;;  %p1541_p6 = scmp.lt.s32.totalorder %s1539_s11, %s1533_s9 }
 0x127   : > { %p1542_p8 = por %p1541_p6, %p1540_p13 }
 0x128   : > { %v518_v22 = vpop.permute.xlu1 %517  ;;  %v510_v23 = vpop.permute.xlu0 %509 }
 0x129   : > { %v710_v51 = vsel %vm700_vm5, %v693_v48, %v518_v22  ;;  %v702_v54 = vsel %vm700_vm5, %v685_v49, %v510_v23  ;;  %p1543_p12 = pnand %p1542_p8, %p1536_p5 }
 0x12c   : > { %v520_v25 = vpop.permute.xlu1 %519  ;;  %v512_v27 = vpop.permute.xlu0 %511 }
 0x12d   : > { %v712_v32 = vsel %vm700_vm5, %v695_v11, %v520_v25  ;;  %v704_v38 = vsel %vm700_vm5, %v687_v14, %v512_v27 }
 0x130   : > { %v549_v28 = vpop.permute.xlu1 %548  ;;  %v541_v29 = vpop.permute.xlu0 %540 }
 0x131   : > { %v727_v8 = vsel %vm717_vm6, %v710_v51, %v549_v28  ;;  %v719_v7 = vsel %vm717_vm6, %v702_v54, %v541_v29 }
 0x134   : > { %v551_v30 = vpop.permute.xlu1 %550  ;;  %v543_v31 = vpop.permute.xlu0 %542 }
 0x135   : > { %v729_v3 = vsel %vm717_vm6, %v712_v32, %v551_v30  ;;  %v721_v18 = vsel %vm717_vm6, %v704_v38, %v543_v31 }
 0x138   : > { %v580_v33 = vpop.permute.xlu1 %579  ;;  %v572_v34 = vpop.permute.xlu0 %571 }
 0x139   : > { %v744_v56 = vsel %vm734_vm7, %v727_v8, %v580_v33  ;;  %v736_v10 = vsel %vm734_vm7, %v719_v7, %v572_v34 }
 0x13c   : > { %v582_v36 = vpop.permute.xlu1 %581  ;;  %v574_v37 = vpop.permute.xlu0 %573 }
 0x13d   : > { %v746_v19 = vsel %vm734_vm7, %v729_v3, %v582_v36  ;;  %v738_v1 = vsel %vm734_vm7, %v721_v18, %v574_v37 }
 0x140   : > { %v621_v39 = vpop.permute.xlu1 %620  ;;  %v613_v40 = vpop.permute.xlu0 %612 }
 0x141   : > { %v761_v57 = vsel %vm751_vm8, %v744_v56, %v621_v39  ;;  %v753_v58 = vsel %vm751_vm8, %v736_v10, %v613_v40 }
 0x144   : > { %v623_v41 = vpop.permute.xlu1 %622  ;;  %v615_v42 = vpop.permute.xlu0 %614 }
 0x145   : > { %v763_v20 = vsel %vm751_vm8, %v746_v19, %v623_v41  ;;  %v755_v21 = vsel %vm751_vm8, %v738_v1, %v615_v42 }
 0x148   : > { %v640_v43 = vpop.permute.xlu1 %639  ;;  %v632_v44 = vpop.permute.xlu0 %631 }
 0x149   : > { %v778_v16 = vsel %vm768_vm9, %v761_v57, %v640_v43  ;;  %v770_v60 = vsel %vm768_vm9, %v753_v58, %v632_v44 }
 0x14c   : > { %v642_v53 = vpop.permute.xlu1 %641  ;;  %v634_v55 = vpop.permute.xlu0 %633 }
 0x14d   : > { %v780_v50 = vsel %vm768_vm9, %v763_v20, %v642_v53  ;;  %v772_v45 = vsel %vm768_vm9, %v755_v21, %v634_v55 }
 0x150   : > { %v659_v59 = vpop.permute.xlu1 %658  ;;  %v651_v24 = vpop.permute.xlu0 %650 }
 0x151   : > { %v795_v26 = vsel %vm785_vm10, %v778_v16, %v659_v59  ;;  %v787_v63 = vsel %vm785_vm10, %v770_v60, %v651_v24 }
 0x152   : > { %1233 = vmatprep.mubr.msk.bf16.mxu1 %vm822_vm11, %v795_v26  ;;  %1225 = vmatprep.mubr.msk.bf16.mxu0 %vm822_vm11, %v787_v63 }
 0x154   : > { %v364_v15 = vpop.permute.xlu1 %363  ;;  %v356_v17 = vpop.permute.xlu0 %355 }
 0x155   : > { %v680_v51 = vsel %vm666_vm3, %v1983_v2, %v364_v15  ;;  %v672_v53 = vsel %vm666_vm3, %v1975_v0, %v356_v17 }
 0x158   : > { %v661_v35 = vpop.permute.xlu1 %660  ;;  %v653_v61 = vpop.permute.xlu0 %652 }
 0x159   : > { %v797_v52 = vsel %vm785_vm10, %v780_v50, %v661_v35  ;;  %v789_v5 = vsel %vm785_vm10, %v772_v45, %v653_v61  ;;  %v2314_v61 = vld [vmem:[#allocation7] ss:$0 sm:$0xff] }
 0x15a   : > { %1234 = vmatmul.mubr.msk.bf16.vlgmr.msra.gmra.mrb[0].mxu1 %vm822_vm11, %v797_v52  ;;  %1226 = vmatmul.mubr.msk.bf16.vlgmr.msra.gmra.mrb[0].mxu0 %vm822_vm11, %v789_v5  ;;  %v2316_v5 = vld [vmem:[#allocation8] ss:$0 sm:$0xff] }
 0x15c   : > { %v366_v6 = vpop.permute.xlu1 %365  ;;  %v358_v13 = vpop.permute.xlu0 %357 }
 0x15d   : > { %v682_v58 = vsel %vm666_vm3, %v2004_v9, %v366_v6  ;;  %v674_v0 = vsel %vm666_vm3, %v2011_v12, %v358_v13 }
 0x160   : > { %v385_v22 = vpop.permute.xlu1 %384  ;;  %v377_v23 = vpop.permute.xlu0 %376 }
 0x161   : > { %v697_v54 = vsel %vm683_vm4, %v680_v51, %v385_v22  ;;  %v689_v8 = vsel %vm683_vm4, %v672_v53, %v377_v23 }
 0x164   : > { %v387_v25 = vpop.permute.xlu1 %386  ;;  %v379_v27 = vpop.permute.xlu0 %378 }
 0x165   : > { %v699_v59 = vsel %vm683_vm4, %v682_v58, %v387_v25  ;;  %v691_v26 = vsel %vm683_vm4, %v674_v0, %v379_v27 }
 0x168   : > { %v522_v28 = vpop.permute.xlu1 %521  ;;  %v514_v29 = vpop.permute.xlu0 %513 }
 0x169   : > { %v714_v55 = vsel %vm700_vm5, %v697_v54, %v522_v28  ;;  %v706_v56 = vsel %vm700_vm5, %v689_v8, %v514_v29 }
 0x16c   : > { %v524_v30 = vpop.permute.xlu1 %523  ;;  %v516_v31 = vpop.permute.xlu0 %515 }
 0x16d   : > { %v716_v62 = vsel %vm700_vm5, %v699_v59, %v524_v30  ;;  %v708_v11 = vsel %vm700_vm5, %v691_v26, %v516_v31 }
 0x170   : > { %v553_v33 = vpop.permute.xlu1 %552  ;;  %v545_v34 = vpop.permute.xlu0 %544 }
 0x171   : > { %v731_v10 = vsel %vm717_vm6, %v714_v55, %v553_v33  ;;  %v723_v2 = vsel %vm717_vm6, %v706_v56, %v545_v34 }
 0x174   : > { %v555_v36 = vpop.permute.xlu1 %554  ;;  %v547_v37 = vpop.permute.xlu0 %546 }
 0x175   : > { %v733_v14 = vsel %vm717_vm6, %v716_v62, %v555_v36  ;;  %v725_v38 = vsel %vm717_vm6, %v708_v11, %v547_v37 }
 0x178   : > { %v584_v39 = vpop.permute.xlu1 %583  ;;  %v576_v40 = vpop.permute.xlu0 %575 }
 0x179   : > { %v748_v16 = vsel %vm734_vm7, %v731_v10, %v584_v39  ;;  %v740_v60 = vsel %vm734_vm7, %v723_v2, %v576_v40 }
 0x17c   : > { %v586_v41 = vpop.permute.xlu1 %585  ;;  %v578_v42 = vpop.permute.xlu0 %577 }
 0x17d   : > { %v750_v3 = vsel %vm734_vm7, %v733_v14, %v586_v41  ;;  %v742_v18 = vsel %vm734_vm7, %v725_v38, %v578_v42 }
 0x180   : > { %v625_v43 = vpop.permute.xlu1 %624  ;;  %v617_v44 = vpop.permute.xlu0 %616 }
 0x181   : > { %v765_v24 = vsel %vm751_vm8, %v748_v16, %v625_v43  ;;  %v757_v63 = vsel %vm751_vm8, %v740_v60, %v617_v44 }
 0x184   : > { %v627_v46 = vpop.permute.xlu1 %626  ;;  %v619_v47 = vpop.permute.xlu0 %618 }
 0x185   : > { %v767_v19 = vsel %vm751_vm8, %v750_v3, %v627_v46  ;;  %v759_v1 = vsel %vm751_vm8, %v742_v18, %v619_v47 }
 0x188   : > { %v644_v48 = vpop.permute.xlu1 %643  ;;  %v636_v49 = vpop.permute.xlu0 %635 }
 0x189   : > { %v782_v9 = vsel %vm768_vm9, %v765_v24, %v644_v48  ;;  %v774_v12 = vsel %vm768_vm9, %v757_v63, %v636_v49 }
 0x18c   : > { %v646_v7 = vpop.permute.xlu1 %645  ;;  %v638_v57 = vpop.permute.xlu0 %637 }
 0x18d   : > { %v784_v20 = vsel %vm768_vm9, %v767_v19, %v646_v7  ;;  %v776_v50 = vsel %vm768_vm9, %v759_v1, %v638_v57 }
 0x190   : > { %v663_v4 = vpop.permute.xlu1 %662  ;;  %v655_v15 = vpop.permute.xlu0 %654 }
 0x191   : > { %v799_v32 = vsel %vm785_vm10, %v782_v9, %v663_v4  ;;  %v791_v17 = vsel %vm785_vm10, %v774_v12, %v655_v15 }
 0x192   : > { %1237 = vmatprep.mubr.msk.bf16.mxu1 %vm822_vm11, %v799_v32  ;;  %1229 = vmatprep.mubr.msk.bf16.mxu0 %vm822_vm11, %v791_v17 }
 0x194   : > { %v665_v21 = vpop.permute.xlu1 %664  ;;  %v657_v45 = vpop.permute.xlu0 %656 }
 0x195   : > { %v801_v35 = vsel %vm785_vm10, %v784_v20, %v665_v21  ;;  %v793_v52 = vsel %vm785_vm10, %v776_v50, %v657_v45 }
 0x196   : > { %1238 = vmatmul.mubr.msk.bf16.gmra.mrb[4].mxu1 %vm822_vm11, %v801_v35  ;;  %1230 = vmatmul.mubr.msk.bf16.gmra.mrb[4].mxu0 %vm822_vm11, %v793_v52 }
 0x22d   : > { %v1235_v6 = vpop.f32.mrb[0].mxu1  ;;  %v1227_v13 = vpop.f32.mrb[0].mxu0 }
 0x22e   : > { %v957_v22 = vmul.f32 %v1235_v6, %v2314_v61  ;;  %v909_v23 = vpop.f32.mrb[1].mxu1  ;;  %v949_v25 = vmul.f32 %v1227_v13, %v2314_v61  ;;  %v877_v27 = vpop.f32.mrb[1].mxu0 }
 0x22f   : > { %v955_v28 = vmul.f32 %v2314_v61, %v909_v23  ;;  %v1236_v29 = vpop.f32.mrb[2].mxu1  ;;  %v947_v31 = vmul.f32 %v2314_v61, %v877_v27  ;;  %v1228_v33 = vpop.f32.mrb[2].mxu0 }
 0x230   : > { %v980_v30 = vadd.f32 %v2316_v5, %v957_v22  ;;  %v958_v34 = vmul.f32 %v1236_v29, %v2314_v61  ;;  %v912_v36 = vpop.f32.mrb[3].mxu1  ;;  %v972_v37 = vadd.f32 %v2316_v5, %v949_v25  ;;  %v950_v40 = vmul.f32 %v1228_v33, %v2314_v61  ;;  %v880_v41 = vpop.f32.mrb[3].mxu0 }
 0x231   : > { %v978_v39 = vadd.f32 %v2316_v5, %v955_v28  ;;  %v956_v42 = vmul.f32 %v2314_v61, %v912_v36  ;;  %v970_v44 = vadd.f32 %v2316_v5, %v947_v31  ;;  %v948_v47 = vmul.f32 %v2314_v61, %v880_v41 }
 0x232   : > { %v996_v43 = vmax.f32 %v980_v30, 0.0  ;;  %v981_v46 = vadd.f32 %v2316_v5, %v958_v34  ;;  %v988_v48 = vmax.f32 %v972_v37, 0.0  ;;  %v973_v51 = vadd.f32 %v2316_v5, %v950_v40 }
 0x233   : > { %v994_v49 = vmax.f32 %v978_v39, 0.0  ;;  %v979_v53 = vadd.f32 %v2316_v5, %v956_v42  ;;  %v986_v54 = vmax.f32 %v970_v44, 0.0  ;;  %v971_v55 = vadd.f32 %v2316_v5, %v948_v47 }
 0x234   : > { %1012 = vst [vmem:[%s2335_s1 + $0x50] sm:$0xff] %v996_v43  ;;  %v997_v8 = vmax.f32 %v981_v46, 0.0  ;;  %1004 = vst [vmem:[%s2335_s1 + $0x10] sm:$0xff] %v988_v48  ;;  %v989_v7 = vmax.f32 %v973_v51, 0.0 }
 0x235   : > { %1010 = vst [vmem:[%s2335_s1 + $0x40] sm:$0xff] %v994_v49  ;;  %v995_v56 = vmax.f32 %v979_v53, 0.0  ;;  %1002 = vst [vmem:[%s2335_s1] sm:$0xff] %v986_v54  ;;  %v987_v10 = vmax.f32 %v971_v55, 0.0 }
 0x236   : > { %1013 = vst [vmem:[%s2335_s1 + $0x58] sm:$0xff] %v997_v8  ;;  %1005 = vst [vmem:[%s2335_s1 + $0x18] sm:$0xff] %v989_v7 }
 0x237   : > { %1011 = vst [vmem:[%s2335_s1 + $0x48] sm:$0xff] %v995_v56  ;;  %1003 = vst [vmem:[%s2335_s1 + $0x8] sm:$0xff] %v987_v10 }
 0x269   : > { %v1239_v57 = vpop.f32.mrb[4].mxu1  ;;  %v1231_v58 = vpop.f32.mrb[4].mxu0 }
 0x26a   : > { %v961_v2 = vmul.f32 %v1239_v57, %v2314_v61  ;;  %v925_v16 = vpop.f32.mrb[5].mxu1  ;;  %v953_v0 = vmul.f32 %v1231_v58, %v2314_v61  ;;  %v893_v59 = vpop.f32.mrb[5].mxu0 }
 0x26b   : > { %v959_v60 = vmul.f32 %v2314_v61, %v925_v16  ;;  %v1240_v24 = vpop.f32.mrb[6].mxu1  ;;  %v951_v62 = vmul.f32 %v2314_v61, %v893_v59  ;;  %v1232_v63 = vpop.f32.mrb[6].mxu0 }
 0x26c   : > { %v984_v26 = vadd.f32 %v2316_v5, %v961_v2  ;;  %v962_v9 = vmul.f32 %v1240_v24, %v2314_v61  ;;  %v928_v4 = vpop.f32.mrb[7].mxu1  ;;  %v976_v11 = vadd.f32 %v2316_v5, %v953_v0  ;;  %v954_v12 = vmul.f32 %v1232_v63, %v2314_v61  ;;  %v896_v32 = vpop.f32.mrb[7].mxu0 }
 0x26d   : > { %v982_v14 = vadd.f32 %v2316_v5, %v959_v60  ;;  %v960_v15 = vmul.f32 %v2314_v61, %v928_v4  ;;  %v974_v3 = vadd.f32 %v2316_v5, %v951_v62  ;;  %v952_v18 = vmul.f32 %v2314_v61, %v896_v32 }
 0x26e   : > { %v1000_v38 = vmax.f32 %v984_v26, 0.0  ;;  %v985_v17 = vadd.f32 %v2316_v5, %v962_v9  ;;  %v992_v19 = vmax.f32 %v976_v11, 0.0  ;;  %v977_v20 = vadd.f32 %v2316_v5, %v954_v12 }
 0x26f   : > { %v998_v1 = vmax.f32 %v982_v14, 0.0  ;;  %v983_v21 = vadd.f32 %v2316_v5, %v960_v15  ;;  %v990_v50 = vmax.f32 %v974_v3, 0.0  ;;  %v975_v45 = vadd.f32 %v2316_v5, %v952_v18 }
 0x270   : > { %1016 = vst [vmem:[%s2335_s1 + $0x70] sm:$0xff] %v1000_v38  ;;  %v1001_v35 = vmax.f32 %v985_v17, 0.0  ;;  %1008 = vst [vmem:[%s2335_s1 + $0x30] sm:$0xff] %v992_v19  ;;  %v993_v52 = vmax.f32 %v977_v20, 0.0 }
 0x271   : > { %1014 = vst [vmem:[%s2335_s1 + $0x60] sm:$0xff] %v998_v1  ;;  %v999_v61 = vmax.f32 %v983_v21, 0.0  ;;  %1006 = vst [vmem:[%s2335_s1 + $0x20] sm:$0xff] %v990_v50  ;;  %v991_v6 = vmax.f32 %v975_v45, 0.0 }
 0x272   : > { %1017 = vst [vmem:[%s2335_s1 + $0x78] sm:$0xff] %v1001_v35  ;;  %1009 = vst [vmem:[%s2335_s1 + $0x38] sm:$0xff] %v993_v52 }
 0x273   : > { %1015 = vst [vmem:[%s2335_s1 + $0x68] sm:$0xff] %v999_v61  ;;  %1007 = vst [vmem:[%s2335_s1 + $0x28] sm:$0xff] %v991_v6 }
 0x274   : > { %1546 = shalt.err (!%p1543_p12)
}
 0x275   : > { %s1547_s22 = scalar_lea.hbm %s2374_s27, 2048  ;;  %s1551_s13 = scalar_lea.hbm %s2490_s10, 8192 }
 0x276   : > { %p1548_p4 = scmp.ne.s32.totalorder %s2374_s27, %s1547_s22  ;;  %p1552_p0 = scmp.lt.u32.totalorder %s2374_s27, %s2490_s10 }
 0x277   : > { %p1553_p1 = scmp.lt.u32.totalorder %s1551_s13, %s1547_s22  ;;  %p1555_p10 = scmp.lt.u32.totalorder %s1547_s22, %s2374_s27 }
 0x278   : > { %p1549_p7 = pnand %p1548_p4, %p2491_p2 }
 0x279   : > { %p1554_p11 = por %p1553_p1, %p1552_p0 }
 0x27a   : > { %p1550_p3 = pneg %p1549_p7 }
 0x27b   : > { %p1556_p9 = por %p1555_p10, %p1554_p11 }
 0x27d   : > { %p1557_p5 = pnand %p1556_p9, %p1550_p3 }
 0x27f   : > { %1560 = shalt.err (!%p1557_p5)
}
 0x280   : > { %s1680_s30 = smov 128  }
 0x281   : > { %1266 = dma.vmem_to_hbm [thread:$0]  (%p2491_p2), %s2378_s2, 2048, %s2374_s27, %s2385_s8, %s1680_s30, %s1680_s30, %s1672_s28  }
 0x282 PF: > { %s2492_s26 = sld [smem:[#allocation15_spill]]  ;;  %s2493_s9 = sld [smem:[#allocation18_spill]] }
 0x283   : > { %p1293_p13 = scmp.ge.s32.totalorder %s1663_s25, 2 }
 0x288   : > { %s1049_s12 = sand.u32 1, %s2492_s26   ;;  %p2494_p6 = scmp.ne.s32.totalorder %s2493_s9, 0 }
 0x289   : > { %s1050_s18 = scalar_lea.sflag [#allocation4], %s1049_s12 }
 0x28a   : > { %p1283_p8 = pnand %p1293_p13, %p2494_p6 }
 0x28c   : > { %1618 = dma.done.wait (!%p1283_p8), %s1050_s18, 2048  }
 0x28d   : > { %1620 = vsyncadd (!%p1283_p8), %s1050_s18, 4294965248  ;;  %s22_s25 = sadd.s32 1, %s1663_s25   ;;  %s2495_s7 = smov %s1908_s15 }
 0x28e   : > { %p19_p12 = scmp.ge.s32.totalorder %s22_s25, 6   ;;  %s2496_s15 = smov %s1627_s16 }
 0x28f   : > { %s2497_s16 = smov %s1631_s17  ;;  %s2498_s17 = smov %s2495_s7 }
 0x290   : > { %s2499_s18 = smov %s1639_s19  ;;  %s2500_s19 = smov %s1643_s20 }
 0x291   : > { %s2501_s20 = smov %s1903_s4  ;;  %s2502_s21 = smov %s1655_s23 }
 0x292   : > { %s2503_s22 = smov %s1659_s24  ;;  %s2504_s23 = smov %s2507_s6 }
 0x293   : > { %s2505_s24 = smov %s2511_s5  ;;  %21 = sbr.rel (!%p19_p12) target bundleno = 15 (0xf), region = 94 }
 0x29a   :  { %1055 = vsyncpa [#allocation3], 1 }
 0x29b   :  { %1057 = vsyncpa [#allocation3 + $0x1], 1 }
 0x29c   :  { %1058 = vsyncpa [#allocation6], 1 }
 0x29d   :  { %1059 = vsyncpa [#allocation9], 1 }
 0x29e   :  { %1060 = vsyncpa [#allocation4], 1 }
 0x29f   :  { %1062 = vsyncpa [#allocation4 + $0x1], 1 }

</bundles_post_ra>
